<compile_context>
chip_gen: v7x
topology: tpu7x:2x2x1
jax: 0.10.0
libtpu: 0.0.40
codegen_flags: <defaults>
</compile_context>

<pallas_src>
import jax
import jax.numpy as jnp
from jax.experimental import pallas as pl
from jax.experimental.pallas import tpu as pltpu

DIS_DIM = 256            # self.disDim in the PyTorch module
HALF_DIM = DIS_DIM // 2  # 128


def _round_up(n, m):
    return ((n + m - 1) // m) * m


def discriminator_kernel(x_ref, w1_ref, b1_ref, w2_ref, b2_ref, w3_ref, b3_ref,
                         out_ref):
    """One batch tile of the 3-layer MLP + sigmoid (weights VMEM-resident)."""
    # Layer 1: Linear(Fp -> 256) + ReLU.  bf16 operands, f32 accumulation (MXU).
    x = x_ref[...]                                              # bf16 [TB, Fp]
    h1 = jnp.dot(x, w1_ref[...], preferred_element_type=jnp.float32)
    h1 = jnp.maximum(h1 + b1_ref[...], 0.0)                     # f32 [TB, 256]

    # Layer 2: Linear(256 -> 128) + ReLU.
    h2 = jnp.dot(h1.astype(jnp.bfloat16), w2_ref[...],
                 preferred_element_type=jnp.float32)
    h2 = jnp.maximum(h2 + b2_ref[...], 0.0)                     # f32 [TB, 128]

    # Layer 3: Linear(128 -> 1) + Sigmoid, as a VPU multiply + lane reduction
    # (an N=1 MXU matmul would waste the whole array); b3 is an SMEM scalar.
    logit = jnp.sum(h2 * w3_ref[...], axis=-1, keepdims=True) + b3_ref[0]
    out_ref[...] = jax.nn.sigmoid(logit).astype(out_ref.dtype)


def _vmem_limit_bytes(tb, fp):
    """Scoped-VMEM request derived from the tile working set (generous)."""
    bf16, f32 = 2, 4
    weights = 2 * (fp * DIS_DIM * bf16 + DIS_DIM * HALF_DIM * bf16)  # dbl-buffered
    biases = 2 * (DIS_DIM + HALF_DIM + HALF_DIM) * f32
    x_tiles = 2 * tb * fp * bf16                                     # dbl-buffered x
    out_tiles = 2 * tb * 128 * f32                                   # lane-padded (TB,1)
    temps = tb * (fp + DIS_DIM + HALF_DIM) * f32                     # h1/h2/etc.
    est = weights + biases + x_tiles + out_tiles + temps
    # 2x headroom, >= 32 MiB floor, capped below v7x's 64 MiB physical VMEM.
    return int(min(max(2 * est, 32 * 2**20), 56 * 2**20))


def discriminator_forward(x, params, *, batch_tile=512):
    """x: [B, F] float32 -> [B, 1] float32 (probabilities)."""
    w1, b1, w2, b2, w3, b3 = params
    B, F = x.shape

    Fp = _round_up(F, 128)                   # lane/MXU-aligned feature dim
    TB = min(batch_tile, _round_up(B, 8))    # batch tile, multiple of 8 sublanes
    Bp = _round_up(B, TB)

    # Pad once in HBM; zero rows/cols contribute nothing to x @ W.
    x_p = jnp.pad(x.astype(jnp.bfloat16), ((0, Bp - B), (0, Fp - F)))
    w1_p = jnp.pad(w1.astype(jnp.bfloat16), ((0, Fp - F), (0, 0)))
    w2_b = w2.astype(jnp.bfloat16)
    b1_f = b1.astype(jnp.float32).reshape(1, DIS_DIM)
    b2_f = b2.astype(jnp.float32).reshape(1, HALF_DIM)
    w3_row = w3.astype(jnp.float32).reshape(1, HALF_DIM)   # used on the VPU (f32)
    b3_s = b3.astype(jnp.float32).reshape((1,))            # SMEM scalar

    grid = (Bp // TB,)
    out = pl.pallas_call(
        discriminator_kernel,
        out_shape=jax.ShapeDtypeStruct((Bp, 1), jnp.float32),
        grid_spec=pltpu.PrefetchScalarGridSpec(
            num_scalar_prefetch=0,
            grid=grid,
            in_specs=[
                pl.BlockSpec((TB, Fp), lambda i: (i, 0)),             # x tile
                pl.BlockSpec((Fp, DIS_DIM), lambda i: (0, 0)),        # w1 (resident)
                pl.BlockSpec((1, DIS_DIM), lambda i: (0, 0)),         # b1
                pl.BlockSpec((DIS_DIM, HALF_DIM), lambda i: (0, 0)),  # w2 (resident)
                pl.BlockSpec((1, HALF_DIM), lambda i: (0, 0)),        # b2
                pl.BlockSpec((1, HALF_DIM), lambda i: (0, 0)),        # w3 row
                pl.BlockSpec(memory_space=pltpu.MemorySpace.SMEM),    # b3 scalar
            ],
            out_specs=pl.BlockSpec((TB, 1), lambda i: (i, 0)),
        ),
        compiler_params=pltpu.CompilerParams(
            dimension_semantics=("parallel",),
            vmem_limit_bytes=_vmem_limit_bytes(TB, Fp),
        ),
    )(x_p, w1_p, b1_f, w2_b, b2_f, w3_row, b3_s)
    return out[:B]


def init_params(key, feature_size):
    """Deterministic init mimicking nn.Linear default (uniform +/- 1/sqrt(fan_in)).
    Weights stored as [in, out]; biases as [1, out]."""
    def linear(k, fan_in, fan_out):
        kw, kb = jax.random.split(k)
        bound = 1.0 / jnp.sqrt(fan_in)
        w = jax.random.uniform(kw, (fan_in, fan_out), jnp.float32, -bound, bound)
        b = jax.random.uniform(kb, (1, fan_out), jnp.float32, -bound, bound)
        return w, b

    k1, k2, k3 = jax.random.split(key, 3)
    w1, b1 = linear(k1, feature_size, DIS_DIM)
    w2, b2 = linear(k2, DIS_DIM, HALF_DIM)
    w3, b3 = linear(k3, HALF_DIM, 1)
    return (w1, b1, w2, b2, w3, b3)


def reference_forward(x, params):
    """Pure-JAX f32 reference for correctness checking."""
    w1, b1, w2, b2, w3, b3 = params
    h1 = jnp.maximum(x @ w1 + b1, 0.0)
    h2 = jnp.maximum(h1 @ w2 + b2, 0.0)
    return jax.nn.sigmoid(h2 @ w3 + b3)


if __name__ == "__main__":
    key = jax.random.PRNGKey(0)
    k_data, k_param = jax.random.split(key)

    batch = 8
    feature_size = 64   # dataset_train_object.featureSize (small synthetic choice)

    # Binary-ish EHR-like input in [0, 1], matching np.clip(sample, 0, 1)
    x = jax.random.uniform(k_data, (batch, feature_size), jnp.float32, 0.0, 1.0)
    params = init_params(k_param, feature_size)

    out = jax.block_until_ready(discriminator_forward(x, params))
    ref = reference_forward(x, params)
    assert out.shape == (batch, 1)
    # bf16 matmul operands -> loosen tolerance vs the pure-f32 reference.
    assert jnp.allclose(out, ref, atol=2e-2, rtol=0.0), float(jnp.max(jnp.abs(out - ref)))

    # Also exercise the multi-tile, software-pipelined grid path.
    x2 = jax.random.uniform(jax.random.PRNGKey(1), (24, feature_size),
                            jnp.float32, 0.0, 1.0)
    out2 = jax.block_until_ready(discriminator_forward(x2, params, batch_tile=8))
    ref2 = reference_forward(x2, params)
    assert out2.shape == (24, 1)
    assert jnp.allclose(out2, ref2, atol=2e-2, rtol=0.0)

    print("KERNEL_OK")
</pallas_src>

<mosaic_0001>
module attributes {stable_mosaic.version = 11 : i64} {
  func.func @discriminator_kernel(%arg0: i32, %arg1: memref<8x128xbf16, #tpu.memory_space<vmem>>, %arg2: memref<128x256xbf16, #tpu.memory_space<vmem>>, %arg3: memref<1x256xf32, #tpu.memory_space<vmem>>, %arg4: memref<256x128xbf16, #tpu.memory_space<vmem>>, %arg5: memref<1x128xf32, #tpu.memory_space<vmem>>, %arg6: memref<1x128xf32, #tpu.memory_space<vmem>>, %arg7: memref<1xf32, #tpu.memory_space<smem>>, %arg8: memref<8x1xf32, #tpu.memory_space<vmem>>) attributes {dimension_semantics = [#tpu.dimension_semantics<parallel>], iteration_bounds = array<i64: 1>, scalar_prefetch = 0 : i64, scratch_operands = 0 : i64, tpu.core_type = #tpu.core_type<tc>, window_params = [{transform_indices = @transform_0, window_bounds = array<i64: 8, 128>}, {pipeline_mode = #tpu.pipeline_mode<synchronous>, transform_indices = @transform_1, window_bounds = array<i64: 128, 256>}, {pipeline_mode = #tpu.pipeline_mode<synchronous>, transform_indices = @transform_2, window_bounds = array<i64: 1, 256>}, {pipeline_mode = #tpu.pipeline_mode<synchronous>, transform_indices = @transform_3, window_bounds = array<i64: 256, 128>}, {pipeline_mode = #tpu.pipeline_mode<synchronous>, transform_indices = @transform_4, window_bounds = array<i64: 1, 128>}, {pipeline_mode = #tpu.pipeline_mode<synchronous>, transform_indices = @transform_5, window_bounds = array<i64: 1, 128>}, {transform_indices = @transform_6, window_bounds = array<i64: 1>}, {transform_indices = @transform_7, window_bounds = array<i64: 8, 1>}]} {
    %c0 = arith.constant 0 : index
    %c0_0 = arith.constant 0 : index
    %0 = vector.load %arg1[%c0, %c0_0] : memref<8x128xbf16, #tpu.memory_space<vmem>>, vector<8x128xbf16>
    %c0_1 = arith.constant 0 : index
    %c0_2 = arith.constant 0 : index
    %1 = vector.load %arg2[%c0_1, %c0_2] : memref<128x256xbf16, #tpu.memory_space<vmem>>, vector<128x256xbf16>
    %cst = arith.constant dense<0.000000e+00> : vector<8x256xf32>
    %2 = tpu.matmul %0, %1, %cst {dimension_numbers = #tpu.dot_dimension_numbers<[1], [0], [0], [1], [0, 0, 1, 1], [], []>} : vector<8x128xbf16>, vector<128x256xbf16>, vector<8x256xf32> -> vector<8x256xf32>
    %c0_3 = arith.constant 0 : index
    %c0_4 = arith.constant 0 : index
    %3 = vector.load %arg3[%c0_3, %c0_4] : memref<1x256xf32, #tpu.memory_space<vmem>>, vector<1x256xf32>
    %4 = vector.broadcast %3 : vector<1x256xf32> to vector<8x256xf32>
    %5 = arith.addf %2, %4 : vector<8x256xf32>
    %cst_5 = arith.constant 0.000000e+00 : f32
    %6 = vector.broadcast %cst_5 : f32 to vector<8x256xf32>
    %7 = arith.maximumf %5, %6 : vector<8x256xf32>
    %8 = arith.truncf %7 : vector<8x256xf32> to vector<8x256xbf16>
    %c0_6 = arith.constant 0 : index
    %c0_7 = arith.constant 0 : index
    %9 = vector.load %arg4[%c0_6, %c0_7] : memref<256x128xbf16, #tpu.memory_space<vmem>>, vector<256x128xbf16>
    %cst_8 = arith.constant dense<0.000000e+00> : vector<8x128xf32>
    %10 = tpu.matmul %8, %9, %cst_8 {dimension_numbers = #tpu.dot_dimension_numbers<[1], [0], [0], [1], [0, 0, 1, 1], [], []>} : vector<8x256xbf16>, vector<256x128xbf16>, vector<8x128xf32> -> vector<8x128xf32>
    %c0_9 = arith.constant 0 : index
    %c0_10 = arith.constant 0 : index
    %11 = vector.load %arg5[%c0_9, %c0_10] : memref<1x128xf32, #tpu.memory_space<vmem>>, vector<1x128xf32>
    %12 = vector.broadcast %11 : vector<1x128xf32> to vector<8x128xf32>
    %13 = arith.addf %10, %12 : vector<8x128xf32>
    %cst_11 = arith.constant 0.000000e+00 : f32
    %14 = vector.broadcast %cst_11 : f32 to vector<8x128xf32>
    %15 = arith.maximumf %13, %14 : vector<8x128xf32>
    %c0_12 = arith.constant 0 : index
    %c0_13 = arith.constant 0 : index
    %16 = vector.load %arg6[%c0_12, %c0_13] : memref<1x128xf32, #tpu.memory_space<vmem>>, vector<1x128xf32>
    %17 = vector.broadcast %16 : vector<1x128xf32> to vector<8x128xf32>
    %18 = arith.mulf %15, %17 : vector<8x128xf32>
    %cst_14 = arith.constant dense<0.000000e+00> : vector<8xf32>
    %19 = vector.multi_reduction <add>, %18, %cst_14 [1] : vector<8x128xf32> to vector<8xf32>
    %20 = vector.shape_cast %19 : vector<8xf32> to vector<8x1xf32>
    %c0_15 = arith.constant 0 : index
    %21 = memref.load %arg7[%c0_15] : memref<1xf32, #tpu.memory_space<smem>>
    %22 = vector.broadcast %21 : f32 to vector<8x1xf32>
    %23 = arith.addf %20, %22 : vector<8x1xf32>
    %24 = arith.negf %23 : vector<8x1xf32>
    %25 = math.exp %24 : vector<8x1xf32>
    %cst_16 = arith.constant 1.000000e+00 : f32
    %26 = vector.broadcast %cst_16 : f32 to vector<8x1xf32>
    %27 = arith.addf %26, %25 : vector<8x1xf32>
    %28 = arith.divf %26, %27 : vector<8x1xf32>
    %c0_17 = arith.constant 0 : index
    %c0_18 = arith.constant 0 : index
    %29 = vector.load %arg8[%c0_17, %c0_18] : memref<8x1xf32, #tpu.memory_space<vmem>>, vector<8x1xf32>
    tpu.vector_store %arg8[%c0_17, %c0_18], %28 {strides = array<i32>} : memref<8x1xf32, #tpu.memory_space<vmem>>, vector<8x1xf32>,
    return
  }
  func.func @transform_0(%arg0: i32) -> (i32, i32) {
    %c0_i32 = arith.constant 0 : i32
    %c0_i32_0 = arith.constant 0 : i32
    return %arg0, %c0_i32 : i32, i32
  }
  func.func @transform_1(%arg0: i32) -> (i32, i32) {
    %c0_i32 = arith.constant 0 : i32
    %c0_i32_0 = arith.constant 0 : i32
    %c0_i32_1 = arith.constant 0 : i32
    return %c0_i32, %c0_i32_0 : i32, i32
  }
  func.func @transform_2(%arg0: i32) -> (i32, i32) {
    %c0_i32 = arith.constant 0 : i32
    %c0_i32_0 = arith.constant 0 : i32
    %c0_i32_1 = arith.constant 0 : i32
    return %c0_i32, %c0_i32_0 : i32, i32
  }
  func.func @transform_3(%arg0: i32) -> (i32, i32) {
    %c0_i32 = arith.constant 0 : i32
    %c0_i32_0 = arith.constant 0 : i32
    %c0_i32_1 = arith.constant 0 : i32
    return %c0_i32, %c0_i32_0 : i32, i32
  }
  func.func @transform_4(%arg0: i32) -> (i32, i32) {
    %c0_i32 = arith.constant 0 : i32
    %c0_i32_0 = arith.constant 0 : i32
    %c0_i32_1 = arith.constant 0 : i32
    return %c0_i32, %c0_i32_0 : i32, i32
  }
  func.func @transform_5(%arg0: i32) -> (i32, i32) {
    %c0_i32 = arith.constant 0 : i32
    %c0_i32_0 = arith.constant 0 : i32
    %c0_i32_1 = arith.constant 0 : i32
    return %c0_i32, %c0_i32_0 : i32, i32
  }
  func.func @transform_6(%arg0: i32) -> i32 {
    %c0_i32 = arith.constant 0 : i32
    %c0_i32_0 = arith.constant 0 : i32
    return %c0_i32 : i32
  }
  func.func @transform_7(%arg0: i32) -> (i32, i32) {
    %c0_i32 = arith.constant 0 : i32
    %c0_i32_0 = arith.constant 0 : i32
    return %arg0, %c0_i32 : i32, i32
  }
}

</mosaic_0001>

<bundles_post_ra>
// kernel: tpu_custom_call.1
= control target key start
LH: loop header
LB: loop body
LE: loop exit
PB: predicated region body
PF: predicated region fallthrough
CT: control target
= control target key end

     0   :  { %13 = vsyncpa [#allocation4], 0  ;;  %s702_s0 = inlined_call_operand.hbm [shape: bf16[8,128], index: 0, kind: input, shape index: {}]   ;;  %s703_s1 = inlined_call_operand.hbm [shape: bf16[128,256], index: 1, kind: input, shape index: {}]   ;;  %s704_s2 = inlined_call_operand.vmem [shape: f32[1,256], index: 2, kind: input, shape index: {}]   ;;  %s705_s3 = inlined_call_operand.hbm [shape: bf16[256,128], index: 3, kind: input, shape index: {}]   ;;  %s706_s4 = inlined_call_operand.vmem [shape: f32[1,128], index: 4, kind: input, shape index: {}]   ;;  %s707_s5 = inlined_call_operand.vmem [shape: f32[1,128], index: 5, kind: input, shape index: {}]   ;;  %s708_s6 = inlined_call_operand.<no memory space> [shape: f32[1], index: 6, kind: input, shape index: {}]   ;;  %s709_s7 = inlined_call_operand.vmem [shape: f32[8,1], index: 7, kind: output, shape index: {}]  }
   0x1   :  { %14 = vsyncpa [#allocation6], 0  ;;  %s603_s24 = smov [#allocation5]   ;;  %s533_s28 = scalar_lea.hbm %s703_s1, 2048 }
   0x2   :  { %s30_s25 = sshll.u32 %s603_s24, 4  ;;  %p534_p0 = scmp.ne.s32.totalorder %s703_s1, %s533_s28  ;;  %s31_s25 = int_to_ptr.vmem [resolvable:$true] %s30_s25 }
   0x3   :  { %p537_p1 = scmp.lt.u32.totalorder %s533_s28, %s703_s1 }
   0x5   :  { %p539_p2 = pnand %p537_p1, %p534_p0 }
   0x7   :  { %542 = shalt.err (!%p539_p2)
}
   0x8   :  { %s543_s10 = scalar_lea.vmem %s31_s25, 2048  ;;  %p548_p4 = scmp.lt.s32.totalorder %s31_s25, %s31_s25 }
   0x9   :  { %p544_p3 = scmp.ne.s32.totalorder %s31_s25, %s543_s10  ;;  %p549_p5 = scmp.lt.s32.totalorder %s543_s10, %s543_s10 }
   0xb   :  { %p550_p6 = por %p549_p5, %p548_p4 }
   0xd   :  { %p551_p7 = pnand %p550_p6, %p544_p3 }
   0xf   :  { %554 = shalt.err (!%p551_p7)
}
  0x10   :  { %s604_s11 = smov 128   ;;  %s605_s12 = smov 8  }
  0x11   :  { %36 = dma.hbm_to_vmem [thread:$0]  %s703_s1, 2048, %s31_s25, [#allocation6], %s604_s11, %s604_s11, %s605_s12  }
  0x12   :  { %s606_s15 = smov [#allocation3]   ;;  %s607_s17 = smov [#allocation7]  }
  0x13   :  { %s21_s16 = sshll.u32 %s606_s15, 4  ;;  %s44_s18 = sshll.u32 %s607_s17, 4  ;;  %s22_s16 = int_to_ptr.vmem [resolvable:$true] %s21_s16  ;;  %s45_s18 = int_to_ptr.vmem [resolvable:$true] %s44_s18 }
  0x14   :  { %s555_s21 = scalar_lea.hbm %s702_s0, 64 }
  0x15   :  { %p556_p8 = scmp.ne.s32.totalorder %s702_s0, %s555_s21  ;;  %p559_p9 = scmp.lt.u32.totalorder %s555_s21, %s702_s0 }
  0x17   :  { %p561_p10 = pnand %p559_p9, %p556_p8 }
  0x19   :  { %564 = shalt.err (!%p561_p10)
}
  0x1a   :  { %s565_s1 = scalar_lea.vmem %s22_s16, 64  ;;  %p570_p12 = scmp.lt.s32.totalorder %s22_s16, %s22_s16 }
  0x1b   :  { %p566_p11 = scmp.ne.s32.totalorder %s22_s16, %s565_s1  ;;  %p571_p13 = scmp.lt.s32.totalorder %s565_s1, %s565_s1 }
  0x1d   :  { %p572_p0 = por %p571_p13, %p570_p12 }
  0x1f   :  { %p573_p1 = pnand %p572_p0, %p566_p11 }
  0x21   :  { %576 = shalt.err (!%p573_p1)
}
  0x22   :  { %24 = dma.hbm_to_vmem [thread:$0]  %s702_s0, 64, %s22_s16, [#allocation4]  }
  0x23   :  { %s577_s30 = scalar_lea.hbm %s705_s3, 2048 }
  0x24   :  { %p578_p2 = scmp.ne.s32.totalorder %s705_s3, %s577_s30  ;;  %p581_p3 = scmp.lt.u32.totalorder %s577_s30, %s705_s3 }
  0x26   :  { %p583_p4 = pnand %p581_p3, %p578_p2 }
  0x28   :  { %586 = shalt.err (!%p583_p4)
}
  0x29   :  { %s587_s12 = scalar_lea.vmem %s45_s18, 2048  ;;  %p592_p6 = scmp.lt.s32.totalorder %s45_s18, %s45_s18 }
  0x2a   :  { %p588_p5 = scmp.ne.s32.totalorder %s45_s18, %s587_s12  ;;  %p593_p7 = scmp.lt.s32.totalorder %s587_s12, %s587_s12 }
  0x2c   :  { %p594_p8 = por %p593_p7, %p592_p6 }
  0x2e   :  { %p595_p9 = pnand %p594_p8, %p588_p5 }
  0x30   :  { %598 = shalt.err (!%p595_p9)
}
  0x31   :  { %s608_s0 = smov 64   ;;  %s609_s13 = smov 4  }
  0x32   :  { %50 = dma.hbm_to_vmem [thread:$0]  %s705_s3, 2048, %s45_s18, [#allocation6], %s608_s0, %s608_s0, %s609_s13  }
  0x33   :  { %599 = dma.done.wait [#allocation4], 64  }
  0x34   :  { %600 = vsyncadd [#allocation4], 4294967232 }
  0x35   :  { %601 = dma.done.wait [#allocation6], 4096  }
  0x36   :  { %602 = vsyncadd [#allocation6], 4294963200  ;;  %v610_v0 = vmov 0   ;;  %v489_v1 = vld [vmem:[#allocation5 + $0x4] ss:$8 sps:$4 sm:$0xff]   ;;  %v517_v15 = vld [vmem:[#allocation7 + $0x50] sm:$0xff]   ;;  %v86_v34 = vlaneseq  ;;  %v408_v61 = vstv %s708_s6 }
  0x37   :  { %208 = vmatprep.mubr.bf16.mxu0 %v610_v0  ;;  %v491_v2 = vld [vmem:[#allocation5] ss:$8 sps:$4 sm:$0xff]   ;;  %176 = vmatprep.subr.bf16.mxu0 %v489_v1  ;;  %v492_v3 = vld [vmem:[#allocation5 + $0x14] ss:$8 sps:$4 sm:$0xff]   ;;  %v494_v4 = vld [vmem:[#allocation5 + $0x10] ss:$8 sps:$4 sm:$0xff]  }
  0x38   :  { %177 = vmatpush1.bf16.msra.mxu0 %v491_v2  ;;  %v495_v5 = vld [vmem:[#allocation5 + $0x24] ss:$8 sps:$4 sm:$0xff]   ;;  %v497_v6 = vld [vmem:[#allocation5 + $0x20] ss:$8 sps:$4 sm:$0xff]   ;;  %v498_v7 = vld [vmem:[#allocation5 + $0x34] ss:$8 sps:$4 sm:$0xff]  }
  0x39   :  { %178 = vmatprep.subr.bf16.mxu0 %v492_v3  ;;  %v500_v8 = vld [vmem:[#allocation5 + $0x30] ss:$8 sps:$4 sm:$0xff]   ;;  %v501_v9 = vld [vmem:[#allocation5 + $0x44] ss:$8 sps:$4 sm:$0xff]   ;;  %v503_v12 = vld [vmem:[#allocation5 + $0x40] ss:$8 sps:$4 sm:$0xff]  }
  0x3a   :  { %v513_v10 = vld [vmem:[#allocation7 + $0x40] sm:$0xff]   ;;  %v515_v13 = vld [vmem:[#allocation7 + $0x48] sm:$0xff]   ;;  %v504_v16 = vld [vmem:[#allocation5 + $0x54] ss:$8 sps:$4 sm:$0xff]   ;;  %v87_v35 = vshrl.u32 %v86_v34, 7  ;;  %vm416_vm0 = vcmask 7168  }
  0x3b   :  { %v514_v11 = vld [vmem:[#allocation7] sm:$0xff]   ;;  %459 = vmatprep.subr.bf16.mxu1 %v513_v10  ;;  %v516_v14 = vld [vmem:[#allocation7 + $0x8] sm:$0xff]   ;;  %v506_v17 = vld [vmem:[#allocation5 + $0x50] ss:$8 sps:$4 sm:$0xff]  }
  0x3c   :  { %179 = vmatpush1.bf16.msra.mxu0 %v494_v4  ;;  %460 = vmatpush3.bf16.msra.mxu1 %v514_v11  ;;  %v518_v18 = vld [vmem:[#allocation7 + $0x10] sm:$0xff]   ;;  %v519_v19 = vld [vmem:[#allocation7 + $0x58] sm:$0xff]   ;;  %v507_v20 = vld [vmem:[#allocation5 + $0x64] ss:$8 sps:$4 sm:$0xff]   ;;  %v88_v36 = vsub.s32 0, %v87_v35  ;;  %v92_v38 = vsub.s32 1, %v87_v35 }
  0x3d   :  { %180 = vmatprep.subr.bf16.mxu0 %v495_v5  ;;  %461 = vmatprep.subr.bf16.mxu1 %v515_v13  ;;  %v509_v21 = vld [vmem:[#allocation5 + $0x60] ss:$8 sps:$4 sm:$0xff]   ;;  %v510_v22 = vld [vmem:[#allocation5 + $0x74] ss:$8 sps:$4 sm:$0xff]   ;;  %v512_v26 = vld [vmem:[#allocation5 + $0x70] ss:$8 sps:$4 sm:$0xff]  }
  0x3e   :  { %v520_v23 = vld [vmem:[#allocation7 + $0x18] sm:$0xff]   ;;  %v521_v24 = vld [vmem:[#allocation7 + $0x60] sm:$0xff]   ;;  %v523_v27 = vld [vmem:[#allocation7 + $0x68] sm:$0xff]  }
  0x3f   :  { %v522_v25 = vld [vmem:[#allocation7 + $0x20] sm:$0xff]   ;;  %v524_v28 = vld [vmem:[#allocation7 + $0x28] sm:$0xff]   ;;  %v67_v29 = vld [vmem:[#allocation3] sm:$0xf] }
  0x40   :  { %181 = vmatpush1.bf16.msra.mxu0 %v497_v6  ;;  %462 = vmatpush3.bf16.msra.mxu1 %v516_v14  ;;  %v525_v30 = vld [vmem:[#allocation7 + $0x70] sm:$0xff]   ;;  %v527_v32 = vld [vmem:[#allocation7 + $0x78] sm:$0xff]  }
  0x41   :  { %182 = vmatprep.subr.bf16.mxu0 %v498_v7  ;;  %463 = vmatprep.subr.bf16.mxu1 %v517_v15  ;;  %v526_v31 = vld [vmem:[#allocation7 + $0x30] sm:$0xff]   ;;  %v528_v33 = vld [vmem:[#allocation7 + $0x38] sm:$0xff]  }
  0x42   :  { %v84_v37 = vld [vmem:[%s704_s2] sm:$0x3] }
  0x43   :  { %v89_v39 = vrot.slane %v84_v37, %v88_v36  ;;  %v93_v40 = vrot.slane %v84_v37, %v92_v38  ;;  %v440_v53 = vld [vmem:[%s706_s4] ss:$0 sm:$0xff] }
  0x44   :  { %183 = vmatpush1.bf16.msra.mxu0 %v500_v8  ;;  %464 = vmatpush3.bf16.msra.mxu1 %v518_v18  ;;  %v457_v58 = vld [vmem:[%s707_s5] ss:$0 sm:$0xff] }
  0x45   :  { %184 = vmatprep.subr.bf16.mxu0 %v501_v9  ;;  %465 = vmatprep.subr.bf16.mxu1 %v519_v19 }
  0x48   :  { %185 = vmatpush1.bf16.msra.mxu0 %v503_v12  ;;  %466 = vmatpush3.bf16.msra.mxu1 %v520_v23 }
  0x49   :  { %186 = vmatprep.subr.bf16.mxu0 %v504_v16  ;;  %467 = vmatprep.subr.bf16.mxu1 %v521_v24 }
  0x4c   :  { %187 = vmatpush1.bf16.msra.mxu0 %v506_v17  ;;  %468 = vmatpush3.bf16.msra.mxu1 %v522_v25 }
  0x4d   :  { %188 = vmatprep.subr.bf16.mxu0 %v507_v20  ;;  %469 = vmatprep.subr.bf16.mxu1 %v523_v27 }
  0x50   :  { %189 = vmatpush1.bf16.msra.mxu0 %v509_v21  ;;  %470 = vmatpush3.bf16.msra.mxu1 %v524_v28 }
  0x51   :  { %190 = vmatprep.subr.bf16.mxu0 %v510_v22  ;;  %471 = vmatprep.subr.bf16.mxu1 %v525_v30 }
  0x54   :  { %191 = vmatpush1.bf16.msra.mxu0 %v512_v26  ;;  %472 = vmatpush3.bf16.msra.mxu1 %v526_v31 }
  0x55   :  { %473 = vmatprep.subr.bf16.mxu1 %v527_v32 }
  0x57   :  { %209 = vmatmul.mubr.bf16.vlgmr.msra.gmra.mrb[0].mxu0 %v67_v29 }
  0x58   :  { %474 = vmatpush3.bf16.msra.mxu1 %v528_v33 }
 0x12a   :  { %v210_v41 = vpop.f32.mrb[0].mxu0 }
 0x12b   :  { %v211_v42 = vadd.f32 %v210_v41, %v89_v39  ;;  %v212_v43 = vpop.f32.mrb[1].mxu0 }
 0x12c   :  { %v213_v44 = vadd.f32 %v212_v43, %v93_v40  ;;  %v214_v45 = vpop.f32.mrb[2].mxu0 }
 0x12d   :  { %v217_v46 = vmax.f32 %v211_v42, 0.0  ;;  %v215_v47 = vpop.f32.mrb[3].mxu0 }
 0x12e   :  { %v218_v48 = vmax.f32 %v213_v44, 0.0 }
 0x12f   :  { %v219_v50 = vpack.c.bf16 %v217_v46, %v217_v46 }
 0x130   :  { %v220_v49 = vpack.c.bf16 %v218_v48, %v218_v48 }
 0x132   :  { %388 = vmatprep.mubr.bf16.mxu1 %v220_v49 }
 0x133   :  { %389 = vmatmul.mubr.bf16.vlgmr.msra.gmra.mrb[0].mxu1 %v219_v50 }
 0x206   :  { %v475_v51 = vpop.f32.mrb[0].mxu1 }
 0x207   :  { %v476_v52 = vpop.f32.mrb[1].mxu1 }
 0x208   :  { %v477_v54 = vadd.f32 %v476_v52, %v475_v51  ;;  %v478_v55 = vpop.f32.mrb[2].mxu1 }
 0x209   :  { %v479_v56 = vpop.f32.mrb[3].mxu1 }
 0x20a   :  { %v391_v57 = vadd.f32 %v477_v54, %v440_v53 }
 0x20c   :  { %v396_v59 = vmax.f32 %v391_v57, 0.0 }
 0x20e   :  { %v404_v60 = vmul.f32 %v457_v58, %v396_v59 }
 0x210   :  { %405 = vadd.xlane.f32.xlu0 %v404_v60 }
 0x29d   :  { %v406_v62 = vpop.xlane.xlu0 %405 }
 0x29e   :  { %v409_v63 = vadd.f32 %v408_v61, %v406_v62 }
 0x2a0   :  { %v458_v0 = vmul.f32 -1.442695, %v409_v63 }
 0x2a2   :  { %529 = vpow2.f32 %v458_v0 }
 0x2ac   :  { %v530_v1 = vpop.eup %529 }
 0x2ad   :  { %v413_v2 = vadd.f32 1.0, %v530_v1 }
 0x2af   :  { %531 = vrcp.f32 %v413_v2 }
 0x2b9   :  { %v532_v3 = vpop.eup %531 }
 0x2ba   :  { %417 = vst.msk [vmem:[%s709_s7] sm:$0xff] %vm416_vm0, %v532_v3 }
 0x2bb   :  { %422 = vsyncpa [#allocation4], 1 }
 0x2bc   :  { %423 = vsyncpa [#allocation6], 1 }

</bundles_post_ra>
